<compile_context>
chip_gen: v7x
topology: tpu7x:2x2x1
jax: 0.10.0
libtpu: 0.0.40
codegen_flags: <defaults>
</compile_context>

<pallas_src>
import functools

import jax
import jax.numpy as jnp
from jax.experimental import pallas as pl
from jax.experimental.pallas import tpu as pltpu


def _layer2_offset(s_size):
    # Start row of the layer-2 region inside the packed slab, aligned to the
    # bf16 sublane pack (16 rows) so the matvec slice begins on a tile boundary.
    return ((s_size + 1 + 15) // 16) * 16


def _policy_kernel_2class(x_ref, p_ref, out_ref, *, s, h, off):
    """x=(B,s) bf16.  p = packed param slab (off+h+1, h) bf16:
         rows [0:s]         : w1 (s,h)
         row  [s]           : b1 (1,h)
         rows [off:off+h]   : col 0 = w2[:,0]-w2[:,1]   (h,1)
         row  [off+h]       : col 0 = b2[0]-b2[1]       (1,1)
    """
    x = x_ref[...]
    # Layer 1: MXU matmul (fp32 acc); bias add + relu ride idle VALU slots.
    hidden = jnp.dot(x, p_ref[0:s, :], preferred_element_type=jnp.float32)
    hidden = jnp.maximum(hidden + p_ref[s:s + 1, :].astype(jnp.float32), 0.0)
    hidden = hidden.astype(jnp.bfloat16)

    # Layer 2 reduced to the logit difference d = l0 - l1: single (B,h)@(h,1) matvec.
    d = jnp.dot(hidden, p_ref[off:off + h, 0:1], preferred_element_type=jnp.float32)
    d = d + p_ref[off + h:off + h + 1, 0:1].astype(jnp.float32)          # (B,1)

    # softmax over 2 classes == sigmoid(d); stable exp(-|d|) form, EXACT
    # reciprocal so p0 and 1-p0 stay inside [0,1] (EUP is far from saturated).
    e = jnp.exp(-jnp.abs(d))
    inv = pl.reciprocal(1.0 + e)
    p0 = jnp.where(d >= 0.0, inv, e * inv)                               # (B,1) fp32

    p0b = jnp.broadcast_to(p0, out_ref.shape)
    col = jax.lax.broadcasted_iota(jnp.int32, out_ref.shape, 1)
    out_ref[...] = jnp.where(col == 0, p0b, 1.0 - p0b).astype(out_ref.dtype)


def _policy_kernel_softmax(x_ref, p_ref, out_ref, *, s, h, off):
    """Generic fallback for a_size != 2; same slab layout with w2 (h,a) / b2 (1,a)."""
    a = out_ref.shape[1]
    x = x_ref[...]
    hidden = jnp.dot(x, p_ref[0:s, :], preferred_element_type=jnp.float32)
    hidden = jnp.maximum(hidden + p_ref[s:s + 1, :].astype(jnp.float32), 0.0)
    hidden = hidden.astype(jnp.bfloat16)
    logits = jnp.dot(hidden, p_ref[off:off + h, 0:a], preferred_element_type=jnp.float32)
    logits = logits + p_ref[off + h:off + h + 1, 0:a].astype(jnp.float32)
    m = jnp.max(logits, axis=1, keepdims=True)
    e = jnp.exp(logits - m)
    inv = pl.reciprocal(jnp.sum(e, axis=1, keepdims=True))
    out_ref[...] = (e * inv).astype(out_ref.dtype)


def pack_params(w1, b1, w2, b2):
    """ONE-TIME packing of all parameters into a single bf16 slab (one VMEM operand).
    w1:(s,h) b1:(1,h) w2:(h,a) b2:(1,a), all = PyTorch W.T / b."""
    s, h = w1.shape
    a = w2.shape[1]
    off = _layer2_offset(s)
    slab = jnp.zeros((off + h + 1, h), jnp.float32)
    slab = slab.at[0:s, :].set(w1.astype(jnp.float32))
    slab = slab.at[s:s + 1, :].set(b1.astype(jnp.float32))
    if a == 2:
        # Only the (w2, b2) column difference is needed for the sigmoid form.
        slab = slab.at[off:off + h, 0:1].set(
            w2[:, 0:1].astype(jnp.float32) - w2[:, 1:2].astype(jnp.float32))
        slab = slab.at[off + h:off + h + 1, 0:1].set(
            b2[:, 0:1].astype(jnp.float32) - b2[:, 1:2].astype(jnp.float32))
    else:
        slab = slab.at[off:off + h, 0:a].set(w2.astype(jnp.float32))
        slab = slab.at[off + h:off + h + 1, 0:a].set(b2.astype(jnp.float32))
    return slab.astype(jnp.bfloat16)


@functools.partial(jax.jit, static_argnames=("a_size",))
def policy_forward(x, slab, *, a_size):
    """x: (B, s_size) bf16; slab: packed params from pack_params().
    Returns (B, a_size) bf16 action probabilities."""
    B, s = x.shape
    h = slab.shape[1]
    off = _layer2_offset(s)
    assert slab.shape[0] == off + h + 1, "slab layout does not match s/h"

    # Trace-time-static pad to a bf16 sublane pack; no-op for B % 16 == 0 (the
    # case used here), so nothing extra sits in the hot path.
    Bp = ((B + 15) // 16) * 16
    xp = x if Bp == B else jnp.pad(x, ((0, Bp - B), (0, 0)))

    kern = _policy_kernel_2class if a_size == 2 else _policy_kernel_softmax
    vmem = pl.BlockSpec(memory_space=pltpu.MemorySpace.VMEM)
    out = pl.pallas_call(
        functools.partial(kern, s=s, h=h, off=off),
        out_shape=jax.ShapeDtypeStruct((Bp, a_size), jnp.bfloat16),
        in_specs=[vmem, vmem],
        out_specs=vmem,
    )(xp, slab)
    return out if Bp == B else out[:B]


def init_params(key, s_size, h_size, a_size):
    """Deterministic init mimicking nn.Linear (uniform +-1/sqrt(fan_in)), bf16.
    Weights kept as (in, out) = PyTorch W.T."""
    k1, k2, k3, k4 = jax.random.split(key, 4)
    bound1 = 1.0 / (s_size ** 0.5)
    bound2 = 1.0 / (h_size ** 0.5)
    w1 = jax.random.uniform(k1, (s_size, h_size), jnp.float32, -bound1, bound1)
    b1 = jax.random.uniform(k2, (1, h_size), jnp.float32, -bound1, bound1)
    w2 = jax.random.uniform(k3, (h_size, a_size), jnp.float32, -bound2, bound2)
    b2 = jax.random.uniform(k4, (1, a_size), jnp.float32, -bound2, bound2)
    return (w1.astype(jnp.bfloat16), b1.astype(jnp.bfloat16),
            w2.astype(jnp.bfloat16), b2.astype(jnp.bfloat16))


def reference_forward(x, w1, b1, w2, b2):
    """Pure-JAX reference of the PyTorch forward (bf16 params, fp32 math)."""
    h = jnp.maximum(x.astype(jnp.float32) @ w1.astype(jnp.float32)
                    + b1.astype(jnp.float32), 0.0)
    logits = h.astype(jnp.bfloat16).astype(jnp.float32) @ w2.astype(jnp.float32) \
             + b2.astype(jnp.float32)
    return jax.nn.softmax(logits, axis=1)


if __name__ == "__main__":
    # CartPole-like sizes: s_size=4 (obs dim), a_size=2 (actions), hidden=32.
    # B=16 = one full bf16 sublane pack (no pad in the hot path).
    B, s_size, h_size, a_size = 16, 4, 32, 2

    key = jax.random.PRNGKey(0)
    kx, kp = jax.random.split(key)
    x = jax.random.normal(kx, (B, s_size), jnp.float32).astype(jnp.bfloat16)
    w1, b1, w2, b2 = init_params(kp, s_size, h_size, a_size)

    slab = pack_params(w1, b1, w2, b2)                 # one-time packing
    probs = policy_forward(x, slab, a_size=a_size)
    probs = jax.block_until_ready(probs)

    # sanity: shape, probs in [0,1], rows sum to ~1, matches pure-JAX reference
    assert probs.shape == (B, a_size)
    pf = probs.astype(jnp.float32)
    assert bool(jnp.all(pf >= 0.0)) and bool(jnp.all(pf <= 1.0))
    row_sums = jnp.sum(pf, axis=1)
    assert bool(jnp.all(jnp.abs(row_sums - 1.0) < 1e-2))
    ref = reference_forward(x, w1, b1, w2, b2)
    assert bool(jnp.all(jnp.abs(pf - ref) < 2e-2))

    # TODO(synk): act()'s Categorical sampling / log_prob stays host-side (not a kernel op).
    print("KERNEL_OK")
</pallas_src>

<mosaic_0001>
module attributes {stable_mosaic.version = 11 : i64} {
  func.func @_policy_kernel_2class(%arg0: memref<16x4xbf16, #tpu.memory_space<vmem>>, %arg1: memref<49x32xbf16, #tpu.memory_space<vmem>>, %arg2: memref<16x2xbf16, #tpu.memory_space<vmem>>) attributes {dimension_semantics = [], scalar_prefetch = 0 : i64, scratch_operands = 0 : i64, tpu.core_type = #tpu.core_type<tc>} {
    %c0 = arith.constant 0 : index
    %c0_0 = arith.constant 0 : index
    %0 = vector.load %arg0[%c0, %c0_0] : memref<16x4xbf16, #tpu.memory_space<vmem>>, vector<16x4xbf16>
    %c0_1 = arith.constant 0 : index
    %c0_2 = arith.constant 0 : index
    %1 = vector.load %arg1[%c0_1, %c0_2] : memref<49x32xbf16, #tpu.memory_space<vmem>>, vector<4x32xbf16>
    %cst = arith.constant dense<0.000000e+00> : vector<16x32xf32>
    %2 = tpu.matmul %0, %1, %cst {dimension_numbers = #tpu.dot_dimension_numbers<[1], [0], [0], [1], [0, 0, 1, 1], [], []>} : vector<16x4xbf16>, vector<4x32xbf16>, vector<16x32xf32> -> vector<16x32xf32>
    %c4 = arith.constant 4 : index
    %c0_3 = arith.constant 0 : index
    %3 = vector.load %arg1[%c4, %c0_3] : memref<49x32xbf16, #tpu.memory_space<vmem>>, vector<1x32xbf16>
    %4 = arith.extf %3 : vector<1x32xbf16> to vector<1x32xf32>
    %5 = vector.broadcast %4 : vector<1x32xf32> to vector<16x32xf32>
    %6 = arith.addf %2, %5 : vector<16x32xf32>
    %cst_4 = arith.constant 0.000000e+00 : f32
    %7 = vector.broadcast %cst_4 : f32 to vector<16x32xf32>
    %8 = arith.maximumf %6, %7 : vector<16x32xf32>
    %9 = arith.truncf %8 : vector<16x32xf32> to vector<16x32xbf16>
    %c16 = arith.constant 16 : index
    %c0_5 = arith.constant 0 : index
    %10 = vector.load %arg1[%c16, %c0_5] : memref<49x32xbf16, #tpu.memory_space<vmem>>, vector<32x1xbf16>
    %cst_6 = arith.constant dense<0.000000e+00> : vector<16x1xf32>
    %11 = tpu.matmul %9, %10, %cst_6 {dimension_numbers = #tpu.dot_dimension_numbers<[1], [0], [0], [1], [0, 0, 1, 1], [], []>} : vector<16x32xbf16>, vector<32x1xbf16>, vector<16x1xf32> -> vector<16x1xf32>
    %c48 = arith.constant 48 : index
    %c0_7 = arith.constant 0 : index
    %12 = vector.load %arg1[%c48, %c0_7] : memref<49x32xbf16, #tpu.memory_space<vmem>>, vector<1x1xbf16>
    %13 = arith.extf %12 : vector<1x1xbf16> to vector<1x1xf32>
    %14 = vector.broadcast %13 : vector<1x1xf32> to vector<16x1xf32>
    %15 = arith.addf %11, %14 : vector<16x1xf32>
    %16 = math.absf %15 : vector<16x1xf32>
    %cst_8 = arith.constant 0.000000e+00 : f32
    %17 = vector.broadcast %cst_8 : f32 to vector<16x1xf32>
    %18 = arith.subf %17, %16 : vector<16x1xf32>
    %19 = math.exp %18 : vector<16x1xf32>
    %cst_9 = arith.constant 1.000000e+00 : f32
    %20 = vector.broadcast %cst_9 : f32 to vector<16x1xf32>
    %21 = arith.addf %20, %19 : vector<16x1xf32>
    %22 = tpu.reciprocal %21 : vector<16x1xf32> -> vector<16x1xf32>
    %cst_10 = arith.constant 0.000000e+00 : f32
    %23 = vector.broadcast %cst_10 : f32 to vector<16x1xf32>
    %24 = arith.cmpf oge, %15, %23 : vector<16x1xf32>
    %25 = arith.mulf %19, %22 : vector<16x1xf32>
    %26 = arith.select %24, %22, %25 : vector<16x1xi1>, vector<16x1xf32>
    %27 = vector.shape_cast %26 : vector<16x1xf32> to vector<16x1xf32>
    %28 = vector.broadcast %27 : vector<16x1xf32> to vector<16x2xf32>
    %29 = tpu.iota {dimensions = array<i32: 1>} : vector<16x2xi32>
    %c0_i32 = arith.constant 0 : i32
    %30 = vector.broadcast %c0_i32 : i32 to vector<16x2xi32>
    %31 = arith.cmpi eq, %29, %30 : vector<16x2xi32>
    %cst_11 = arith.constant 1.000000e+00 : f32
    %32 = vector.broadcast %cst_11 : f32 to vector<16x2xf32>
    %33 = arith.subf %32, %28 : vector<16x2xf32>
    %34 = arith.select %31, %28, %33 : vector<16x2xi1>, vector<16x2xf32>
    %35 = arith.truncf %34 : vector<16x2xf32> to vector<16x2xbf16>
    %c0_12 = arith.constant 0 : index
    %c0_13 = arith.constant 0 : index
    %36 = vector.load %arg2[%c0_12, %c0_13] : memref<16x2xbf16, #tpu.memory_space<vmem>>, vector<16x2xbf16>
    tpu.vector_store %arg2[%c0_12, %c0_13], %35 {strides = array<i32>} : memref<16x2xbf16, #tpu.memory_space<vmem>>, vector<16x2xbf16>,
    return
  }
}

</mosaic_0001>

<bundles_post_ra>
// kernel: policy_forward.1
= control target key start
LH: loop header
LB: loop body
LE: loop exit
PB: predicated region body
PF: predicated region fallthrough
CT: control target
= control target key end

     0   :  { %vm30_vm0 = vcmask 1041408   ;;  %v238_v0 = vmov 0.0   ;;  %vm239_vm1 = vmmov 0   ;;  %vm26_vm2 = vcmask 31744   ;;  %s280_s1 = inlined_call_operand.vmem [shape: bf16[49,32], index: 1, kind: input, shape index: {}]   ;;  %s281_s0 = inlined_call_operand.vmem [shape: bf16[16,4], index: 0, kind: input, shape index: {}]   ;;  %s282_s2 = inlined_call_operand.vmem [shape: bf16[16,2], index: 2, kind: output, shape index: {}]  }
   0x1   :  { %209 = vmatprep.subr.bf16.mxu0 %v238_v0  ;;  %v14_v1 = vld [vmem:[%s280_s1] sm:$0x3]  ;;  %211 = vmatprep.mubr.msk.bf16.mxu0 %vm239_vm1, %v238_v0  ;;  %v228_v4 = vld [vmem:[%s280_s1 + $0x8] sm:$0xff]   ;;  %v229_v5 = vld [vmem:[%s280_s1 + $0x10] sm:$0xff]   ;;  %v17_v6 = vlaneseq  ;;  %vm100_vm3 = vcmask 261120   ;;  %v240_v21 = vmov 0  }
   0x2   :  { %v32_v2 = vsel %vm30_vm0, %v14_v1, 0  ;;  %v227_v3 = vld [vmem:[%s281_s0] sm:$0xff]   ;;  %215 = vmatprep.subr.bf16.mxu1 %v238_v0  ;;  %219 = vmatprep.mubr.msk.bf16.mxu1 %vm239_vm1, %v238_v0  ;;  %v82_v22 = vld [vmem:[%s280_s1 + $0x18] sm:$0x1]  ;;  %vm188_vm7 = vcmask 11264  }
   0x3   :  { %210 = vmatpush3.bf16.msra.mxu0 %v32_v2  ;;  %216 = vmatpush3.bf16.msra.mxu1 %v228_v4  ;;  %v18_v7 = vshrl.u32 %v17_v6, 7  ;;  %v15_v8 = vld [vmem:[%s280_s1] sm:$0x4]  ;;  %v83_v23 = vunpack.c.l.bf16 %v82_v22  ;;  %v174_v48 = vand.u32 127, %v17_v6 }
   0x4   :  { %217 = vmatprep.subr.bf16.mxu1 %v238_v0  ;;  %v16_v9 = vunpack.c.l.bf16 %v15_v8  ;;  %226 = vset.pattern.permute.xlu0 %v240_v21 }
   0x5   :  { %v19_v10 = vsub.s32 4, %v18_v7  ;;  %v86_v24 = vsub.s32 0, %v18_v7  ;;  %vm175_vm6 = vcmp.eq.s32.totalorder %v174_v48, 0 }
   0x6   :  { %212 = vmatmul.mubr.msk.bf16.vlgmr.msra.gmra.mrb[0].mxu0 %vm26_vm2, %v227_v3 }
   0x7   :  { %218 = vmatpush3.bf16.msra.mxu1 %v229_v5  ;;  %v20_v11 = vrot.slane %v16_v9, %v19_v10  ;;  %v87_v25 = vrot.slane %v83_v23, %v86_v24 }
  0xd9   :  { %v68_v12 = vpop.f32.mrb[0].mxu0 }
  0xda   :  { %v69_v13 = vadd.f32 %v68_v12, %v20_v11  ;;  %v213_v14 = vpop.f32.mrb[1].mxu0 }
  0xdb   :  { %v71_v15 = vpop.f32.mrb[2].mxu0 }
  0xdc   :  { %v72_v16 = vadd.f32 %v71_v15, %v20_v11  ;;  %v214_v17 = vpop.f32.mrb[3].mxu0  ;;  %v75_v18 = vmax.f32 %v69_v13, 0.0 }
  0xde   :  { %v76_v19 = vmax.f32 %v72_v16, 0.0 }
  0xe0   :  { %v77_v20 = vpack.c.bf16 %v76_v19, %v75_v18 }
  0xe2   :  { %220 = vmatmul.mubr.msk.bf16.vlgmr.msra.gmra.mrb[0].mxu1 %vm100_vm3, %v77_v20 }
 0x1b5   :  { %v138_v26 = vpop.f32.mrb[0].mxu1 }
 0x1b6   :  { %v139_v27 = vadd.f32 %v138_v26, %v87_v25  ;;  %v221_v28 = vpop.f32.mrb[1].mxu1 }
 0x1b7   :  { %v141_v29 = vpop.f32.mrb[2].mxu1 }
 0x1b8   :  { %v145_v30 = vand.u32 2147483647, %v139_v27  ;;  %v142_v31 = vadd.f32 %v141_v29, %v87_v25  ;;  %v222_v32 = vpop.f32.mrb[3].mxu1  ;;  %vm157_vm4 = vcmp.ge.f32.partialorder %v139_v27, 0.0 }
 0x1ba   :  { %v147_v33 = vsub.f32 0.0, %v145_v30  ;;  %v146_v34 = vand.u32 2147483647, %v142_v31  ;;  %vm158_vm5 = vcmp.ge.f32.partialorder %v142_v31, 0.0 }
 0x1bc   :  { %v149_v35 = vmul.f32 1.442695, %v147_v33  ;;  %v148_v36 = vsub.f32 0.0, %v146_v34 }
 0x1be   :  { %230 = vpow2.f32 %v149_v35  ;;  %v151_v37 = vmul.f32 1.442695, %v148_v36 }
 0x1c0   :  { %232 = vpow2.f32 %v151_v37 }
 0x1c8   :  { %v231_v38 = vpop.eup %230 }
 0x1c9   :  { %v153_v39 = vadd.f32 1.0, %v231_v38 }
 0x1ca   :  { %v233_v40 = vpop.eup %232 }
 0x1cb   :  { %234 = vrcp.f32 %v153_v39  ;;  %v154_v41 = vadd.f32 1.0, %v233_v40 }
 0x1cd   :  { %236 = vrcp.f32 %v154_v41 }
 0x1d5   :  { %v235_v42 = vpop.eup %234 }
 0x1d6   :  { %v159_v43 = vmul.f32 %v235_v42, %v231_v38 }
 0x1d7   :  { %v237_v44 = vpop.eup %236 }
 0x1d8   :  { %v161_v45 = vsel %vm157_vm4, %v235_v42, %v159_v43  ;;  %v160_v46 = vmul.f32 %v237_v44, %v233_v40 }
 0x1d9   :  { %165 = vperm.xlu0 %226, %v161_v45  }
 0x1da   :  { %v162_v47 = vsel %vm158_vm5, %v237_v44, %v160_v46 }
 0x1dd   :  { %170 = vperm.xlu0 %226, %v162_v47  }
 0x258   :  { %v166_v49 = vpop.permute.xlu0 %165 }
 0x259   :  { %v176_v50 = vsub.f32 1.0, %v166_v49 }
 0x25b   :  { %v178_v51 = vsel %vm175_vm6, %v166_v49, %v176_v50 }
 0x25c   :  { %v202_v52 = vpack.c.bf16 %v178_v51, %v178_v51  ;;  %v171_v53 = vpop.permute.xlu0 %170 }
 0x25d   :  { %v177_v54 = vsub.f32 1.0, %v171_v53 }
 0x25e   :  { %189 = vst.msk [vmem:[%s282_s2] sm:$0xf] %vm188_vm7, %v202_v52 }
 0x25f   :  { %v179_v55 = vsel %vm175_vm6, %v171_v53, %v177_v54 }
 0x260   :  { %v203_v56 = vpack.c.bf16 %v179_v55, %v179_v55 }
 0x262   :  { %190 = vst.msk [vmem:[%s282_s2 + $0x4] sm:$0xf] %vm188_vm7, %v203_v56 }

</bundles_post_ra>
